<compile_context>
chip_gen: v6e
topology: v6e:2x2x1
jax: 0.10.0
libtpu: 0.0.40
codegen_flags: <defaults>
</compile_context>

<pallas_src>
import functools

import jax
import jax.numpy as jnp
from jax import lax
from jax.experimental import pallas as pl
from jax.experimental.pallas import tpu as pltpu

LANES = 128
_MIB = 1024 * 1024


def _round_up(x, m):
    return (x + m - 1) // m * m


def _round_down(x, m):
    return x // m * m


def _ce_kernel(logits_ref, tgt_ref, sum_ref, cnt_ref, acc_sum, acc_cnt, *,
               ignore_index, num_classes, s_valid, s_tile, nj):
    c = pl.program_id(1)          # pixel-chunk index (parallel, for megacore)
    j = pl.program_id(2)          # step within chunk (arbitrary / reduction)

    @pl.when(j == 0)
    def _():
        acc_sum[...] = jnp.zeros_like(acc_sum)
        acc_cnt[...] = jnp.zeros_like(acc_cnt)

    x = logits_ref[...]                       # (1, C, s_tile, 128), native dtype
    t = tgt_ref[...]                          # (1, 1, s_tile, 128) int32

    # Numerically-stable logsumexp over the class axis (axis=1 => elementwise
    # work across C separate (s_tile, 128) vreg slabs; exp/log accumulate in f32).
    m = jnp.max(x, axis=1, keepdims=True)                         # (1,1,s_tile,128)
    p = jnp.exp((x - m).astype(jnp.float32))                      # (1,C,s_tile,128) f32
    se = jnp.sum(p, axis=1, keepdims=True)                        # (1,1,s_tile,128) f32
    lse = m.astype(jnp.float32) + jnp.log(se)                     # (1,1,s_tile,128) f32

    # Gather-free target-logit selection.
    if num_classes <= 32:
        # compare targets against scalar class ids -> no class-iota materialization
        tgt_logit = jnp.zeros(t.shape, jnp.float32)
        for cls in range(num_classes):
            xc = x[:, cls:cls + 1].astype(jnp.float32)
            tgt_logit = tgt_logit + jnp.where(t == cls, xc, 0.0)
    else:
        cls_iota = lax.broadcasted_iota(jnp.int32, x.shape, 1)
        tgt_logit = jnp.sum(
            jnp.where(cls_iota == t, x, 0).astype(jnp.float32),
            axis=1, keepdims=True)

    # Validity mask: not ignore_index AND inside the real sublane-row range.
    # Ragged last block is masked via the GLOBAL row index (never via the
    # possibly-garbage OOB target value); jnp.where keeps NaN garbage out.
    sidx = c * nj + j
    row = sidx * s_tile + lax.broadcasted_iota(jnp.int32, t.shape, 2)
    valid = jnp.logical_and(t != ignore_index, row < s_valid)

    acc_sum[...] = acc_sum[...] + jnp.where(valid, lse - tgt_logit, 0.0)
    acc_cnt[...] = acc_cnt[...] + valid.astype(jnp.int32)

    @pl.when(j == nj - 1)
    def _():
        # reduce only the sublane axis here; the lane axis is reduced in glue
        sum_ref[...] = jnp.sum(acc_sum[...], axis=2, keepdims=True)
        cnt_ref[...] = jnp.sum(acc_cnt[...], axis=2, keepdims=True)


def seg_cross_entropy_loss(logits_nchw, targets_bhw, *, ignore_index=-1,
                           logits_block_bytes=2 * _MIB):
    """Mean cross-entropy over non-ignored pixels; matches
    nn.CrossEntropyLoss(ignore_index=ignore_index)(inputs, targets).
    Returns a float32 scalar (like PyTorch), NaN if no valid pixels."""
    B, C, H, W = logits_nchw.shape
    assert targets_bhw.shape == (B, H, W)
    HW = H * W
    HW_pad = _round_up(HW, LANES)

    # Free reshapes only (no transpose).  Padding only triggers if HW % 128 != 0.
    x = logits_nchw.reshape(B, C, HW)                      # keep model dtype (bf16 OK)
    t = targets_bhw.reshape(B, HW)
    if t.dtype != jnp.int32:
        t = t.astype(jnp.int32)
    if HW_pad != HW:
        # TODO(synk): only hit when H*W % 128 != 0; costs one extra HBM pass.
        x = jnp.pad(x, ((0, 0), (0, 0), (0, HW_pad - HW)))
        t = jnp.pad(t, ((0, 0), (0, HW_pad - HW)), constant_values=ignore_index)

    S = HW_pad // LANES
    x = x.reshape(B, C, S, LANES)        # pixels fill sublanes AND lanes
    t = t.reshape(B, 1, S, LANES)

    itemsize = jnp.dtype(x.dtype).itemsize

    # Adaptive pixel tile: ~logits_block_bytes of logits per step, targets block
    # capped at 2 MiB; sublane-row tile is a multiple of 8 or the full extent.
    s_tile = logits_block_bytes // max(1, C * LANES * itemsize)
    s_tile = min(s_tile, (2 * _MIB) // (LANES * 4))
    s_tile = max(8, _round_down(s_tile, 8))
    if s_tile >= S:
        s_tile = S                       # full-extent block is always legal
    nj_total = pl.cdiv(S, s_tile)

    # Megacore: when the batch is tiny, split the pixel axis into 2 parallel
    # chunks so the second TensorCore has work (per-chunk partials reduced in glue).
    nc = 2 if (B < 2 and nj_total >= 2 and nj_total % 2 == 0) else 1
    nj = nj_total // nc
    grid = (B, nc, nj)

    # VMEM budget: double-buffered logits + targets blocks + resident accumulators.
    vmem_bytes = (2 * C * s_tile * LANES * itemsize
                  + 2 * s_tile * LANES * 4
                  + 2 * s_tile * LANES * 4
                  + 4 * 2 * LANES * 4)
    vmem_limit = int(min(max(2 * vmem_bytes, 24 * _MIB), 48 * _MIB))

    kernel = functools.partial(_ce_kernel, ignore_index=ignore_index,
                               num_classes=C, s_valid=S, s_tile=s_tile, nj=nj)

    def in_map(b, c, j, _nj=nj):
        return (b, 0, c * _nj + j, 0)

    def out_map(b, c, j):
        return (b, c, 0, 0)

    cost = pl.CostEstimate(
        flops=6 * B * HW * C,
        transcendentals=B * HW * (C + 1),
        bytes_accessed=int(B * C * HW_pad * itemsize + B * HW_pad * 4
                           + 2 * B * nc * LANES * 4))

    sum_out, cnt_out = pl.pallas_call(
        kernel,
        out_shape=(
            jax.ShapeDtypeStruct((B, nc, 1, LANES), jnp.float32),
            jax.ShapeDtypeStruct((B, nc, 1, LANES), jnp.int32),
        ),
        grid_spec=pltpu.PrefetchScalarGridSpec(
            num_scalar_prefetch=0,
            grid=grid,
            in_specs=[
                pl.BlockSpec((1, C, s_tile, LANES), in_map),
                pl.BlockSpec((1, 1, s_tile, LANES), in_map),
            ],
            out_specs=[
                pl.BlockSpec((1, 1, 1, LANES), out_map),
                pl.BlockSpec((1, 1, 1, LANES), out_map),
            ],
            scratch_shapes=[
                pltpu.VMEM((1, 1, s_tile, LANES), jnp.float32),   # loss partials
                pltpu.VMEM((1, 1, s_tile, LANES), jnp.int32),     # valid counts
            ],
        ),
        compiler_params=pltpu.CompilerParams(
            dimension_semantics=("parallel", "parallel", "arbitrary"),
            vmem_limit_bytes=vmem_limit,
        ),
        cost_estimate=cost,
    )(x, t)

    total = jnp.sum(sum_out)                               # f32
    count = jnp.sum(cnt_out).astype(jnp.float32)           # exact int32 -> f32
    return total / count                                   # float32 scalar


def _reference_loss(logits_nchw, targets_bhw, ignore_index=-1):
    """Pure-JAX reference for verification."""
    B, C, H, W = logits_nchw.shape
    x = jnp.transpose(logits_nchw, (0, 2, 3, 1)).reshape(-1, C).astype(jnp.float32)
    t = targets_bhw.reshape(-1).astype(jnp.int32)
    valid = t != ignore_index
    t_safe = jnp.where(valid, t, 0)
    lse = jax.nn.logsumexp(x, axis=-1)
    tgt = jnp.take_along_axis(x, t_safe[:, None], axis=-1)[:, 0]
    per = jnp.where(valid, lse - tgt, 0.0)
    return jnp.sum(per) / jnp.sum(valid.astype(jnp.float32))


if __name__ == "__main__":
    key = jax.random.PRNGKey(0)
    k1, k2, k3 = jax.random.split(key, 3)

    B, C, H, W = 2, 4, 16, 16
    logits = jax.random.normal(k1, (B, C, H, W), dtype=jnp.float32)
    targets = jax.random.randint(k2, (B, H, W), 0, C, dtype=jnp.int32)
    # sprinkle some ignore_index pixels
    ignore_mask = jax.random.uniform(k3, (B, H, W)) < 0.1
    targets = jnp.where(ignore_mask, -1, targets)

    loss = seg_cross_entropy_loss(logits, targets, ignore_index=-1)
    loss = jax.block_until_ready(loss)

    ref = jax.block_until_ready(_reference_loss(logits, targets, ignore_index=-1))
    assert loss.dtype == jnp.float32
    assert jnp.allclose(loss, ref, rtol=1e-5, atol=1e-5), (loss, ref)

    print("KERNEL_OK")
</pallas_src>

<mosaic_0001>
module attributes {stable_mosaic.version = 11 : i64} {
  func.func @_ce_kernel(%arg0: i32, %arg1: i32, %arg2: i32, %arg3: memref<1x4x2x128xf32, #tpu.memory_space<vmem>>, %arg4: memref<1x1x2x128xi32, #tpu.memory_space<vmem>>, %arg5: memref<1x1x1x128xf32, #tpu.memory_space<vmem>>, %arg6: memref<1x1x1x128xi32, #tpu.memory_space<vmem>>, %arg7: memref<1x1x2x128xf32, #tpu.memory_space<vmem>>, %arg8: memref<1x1x2x128xi32, #tpu.memory_space<vmem>>) attributes {dimension_semantics = [#tpu.dimension_semantics<parallel>, #tpu.dimension_semantics<parallel>, #tpu.dimension_semantics<arbitrary>], iteration_bounds = array<i64: 2, 1, 1>, scalar_prefetch = 0 : i64, scratch_operands = 2 : i64, tpu.core_type = #tpu.core_type<tc>, window_params = [{transform_indices = @transform_0, window_bounds = array<i64: 1, 4, 2, 128>}, {transform_indices = @transform_1, window_bounds = array<i64: 1, 1, 2, 128>}, {transform_indices = @transform_2, window_bounds = array<i64: 1, 1, 1, 128>}, {transform_indices = @transform_3, window_bounds = array<i64: 1, 1, 1, 128>}]} {
    %c0_i32 = arith.constant 0 : i32
    %0 = arith.cmpi eq, %arg2, %c0_i32 : i32
    %1 = arith.extui %0 : i1 to i32
    %c0_i32_0 = arith.constant 0 : i32
    %2 = arith.cmpi ne, %1, %c0_i32_0 : i32
    scf.if %2 {
      %cst_37 = arith.constant 0.000000e+00 : f32
      %63 = vector.broadcast %cst_37 : f32 to vector<1x1x2x128xf32>
      %c0_38 = arith.constant 0 : index
      %c0_39 = arith.constant 0 : index
      %c0_40 = arith.constant 0 : index
      %c0_41 = arith.constant 0 : index
      %64 = vector.load %arg7[%c0_38, %c0_39, %c0_40, %c0_41] : memref<1x1x2x128xf32, #tpu.memory_space<vmem>>, vector<1x1x2x128xf32>
      tpu.vector_store %arg7[%c0_38, %c0_39, %c0_40, %c0_41], %63 {strides = array<i32>} : memref<1x1x2x128xf32, #tpu.memory_space<vmem>>, vector<1x1x2x128xf32>,
      %c0_i32_42 = arith.constant 0 : i32
      %65 = vector.broadcast %c0_i32_42 : i32 to vector<1x1x2x128xi32>
      %c0_43 = arith.constant 0 : index
      %c0_44 = arith.constant 0 : index
      %c0_45 = arith.constant 0 : index
      %c0_46 = arith.constant 0 : index
      %66 = vector.load %arg8[%c0_43, %c0_44, %c0_45, %c0_46] : memref<1x1x2x128xi32, #tpu.memory_space<vmem>>, vector<1x1x2x128xi32>
      tpu.vector_store %arg8[%c0_43, %c0_44, %c0_45, %c0_46], %65 {strides = array<i32>} : memref<1x1x2x128xi32, #tpu.memory_space<vmem>>, vector<1x1x2x128xi32>,
    } else {
    }
    %c0 = arith.constant 0 : index
    %c0_1 = arith.constant 0 : index
    %c0_2 = arith.constant 0 : index
    %c0_3 = arith.constant 0 : index
    %3 = vector.load %arg3[%c0, %c0_1, %c0_2, %c0_3] : memref<1x4x2x128xf32, #tpu.memory_space<vmem>>, vector<1x4x2x128xf32>
    %c0_4 = arith.constant 0 : index
    %c0_5 = arith.constant 0 : index
    %c0_6 = arith.constant 0 : index
    %c0_7 = arith.constant 0 : index
    %4 = vector.load %arg4[%c0_4, %c0_5, %c0_6, %c0_7] : memref<1x1x2x128xi32, #tpu.memory_space<vmem>>, vector<1x1x2x128xi32>
    %cst = arith.constant dense<0xFF800000> : vector<1x2x128xf32>
    %5 = vector.multi_reduction <maximumf>, %3, %cst [1] : vector<1x4x2x128xf32> to vector<1x2x128xf32>
    %6 = vector.shape_cast %5 : vector<1x2x128xf32> to vector<1x1x2x128xf32>
    %7 = vector.broadcast %6 : vector<1x1x2x128xf32> to vector<1x4x2x128xf32>
    %8 = arith.subf %3, %7 : vector<1x4x2x128xf32>
    %9 = math.exp %8 : vector<1x4x2x128xf32>
    %cst_8 = arith.constant dense<0.000000e+00> : vector<1x2x128xf32>
    %10 = vector.multi_reduction <add>, %9, %cst_8 [1] : vector<1x4x2x128xf32> to vector<1x2x128xf32>
    %11 = vector.shape_cast %10 : vector<1x2x128xf32> to vector<1x1x2x128xf32>
    %12 = math.log %11 : vector<1x1x2x128xf32>
    %13 = arith.addf %6, %12 : vector<1x1x2x128xf32>
    %cst_9 = arith.constant 0.000000e+00 : f32
    %14 = vector.broadcast %cst_9 : f32 to vector<1x1x2x128xf32>
    %15 = vector.extract_strided_slice %3 {offsets = [0, 0, 0, 0], sizes = [1, 1, 2, 128], strides = [1, 1, 1, 1]} : vector<1x4x2x128xf32> to vector<1x1x2x128xf32>
    %c0_i32_10 = arith.constant 0 : i32
    %16 = vector.broadcast %c0_i32_10 : i32 to vector<1x1x2x128xi32>
    %17 = arith.cmpi eq, %4, %16 : vector<1x1x2x128xi32>
    %cst_11 = arith.constant 0.000000e+00 : f32
    %18 = vector.broadcast %cst_11 : f32 to vector<1x1x2x128xf32>
    %19 = arith.select %17, %15, %18 : vector<1x1x2x128xi1>, vector<1x1x2x128xf32>
    %20 = arith.addf %14, %19 : vector<1x1x2x128xf32>
    %21 = vector.extract_strided_slice %3 {offsets = [0, 1, 0, 0], sizes = [1, 1, 2, 128], strides = [1, 1, 1, 1]} : vector<1x4x2x128xf32> to vector<1x1x2x128xf32>
    %c1_i32 = arith.constant 1 : i32
    %22 = vector.broadcast %c1_i32 : i32 to vector<1x1x2x128xi32>
    %23 = arith.cmpi eq, %4, %22 : vector<1x1x2x128xi32>
    %cst_12 = arith.constant 0.000000e+00 : f32
    %24 = vector.broadcast %cst_12 : f32 to vector<1x1x2x128xf32>
    %25 = arith.select %23, %21, %24 : vector<1x1x2x128xi1>, vector<1x1x2x128xf32>
    %26 = arith.addf %20, %25 : vector<1x1x2x128xf32>
    %27 = vector.extract_strided_slice %3 {offsets = [0, 2, 0, 0], sizes = [1, 1, 2, 128], strides = [1, 1, 1, 1]} : vector<1x4x2x128xf32> to vector<1x1x2x128xf32>
    %c2_i32 = arith.constant 2 : i32
    %28 = vector.broadcast %c2_i32 : i32 to vector<1x1x2x128xi32>
    %29 = arith.cmpi eq, %4, %28 : vector<1x1x2x128xi32>
    %cst_13 = arith.constant 0.000000e+00 : f32
    %30 = vector.broadcast %cst_13 : f32 to vector<1x1x2x128xf32>
    %31 = arith.select %29, %27, %30 : vector<1x1x2x128xi1>, vector<1x1x2x128xf32>
    %32 = arith.addf %26, %31 : vector<1x1x2x128xf32>
    %33 = vector.extract_strided_slice %3 {offsets = [0, 3, 0, 0], sizes = [1, 1, 2, 128], strides = [1, 1, 1, 1]} : vector<1x4x2x128xf32> to vector<1x1x2x128xf32>
    %c3_i32 = arith.constant 3 : i32
    %34 = vector.broadcast %c3_i32 : i32 to vector<1x1x2x128xi32>
    %35 = arith.cmpi eq, %4, %34 : vector<1x1x2x128xi32>
    %cst_14 = arith.constant 0.000000e+00 : f32
    %36 = vector.broadcast %cst_14 : f32 to vector<1x1x2x128xf32>
    %37 = arith.select %35, %33, %36 : vector<1x1x2x128xi1>, vector<1x1x2x128xf32>
    %38 = arith.addf %32, %37 : vector<1x1x2x128xf32>
    %c1_i32_15 = arith.constant 1 : i32
    %39 = arith.muli %arg1, %c1_i32_15 : i32
    %40 = arith.addi %39, %arg2 : i32
    %c2_i32_16 = arith.constant 2 : i32
    %41 = arith.muli %40, %c2_i32_16 : i32
    %42 = tpu.iota {dimensions = array<i32: 2>} : vector<1x1x2x128xi32>
    %43 = vector.broadcast %41 : i32 to vector<1x1x2x128xi32>
    %44 = arith.addi %43, %42 : vector<1x1x2x128xi32>
    %c-1_i32 = arith.constant -1 : i32
    %45 = vector.broadcast %c-1_i32 : i32 to vector<1x1x2x128xi32>
    %46 = arith.cmpi ne, %4, %45 : vector<1x1x2x128xi32>
    %c2_i32_17 = arith.constant 2 : i32
    %47 = vector.broadcast %c2_i32_17 : i32 to vector<1x1x2x128xi32>
    %48 = arith.cmpi slt, %44, %47 : vector<1x1x2x128xi32>
    %49 = arith.andi %46, %48 : vector<1x1x2x128xi1>
    %c0_18 = arith.constant 0 : index
    %c0_19 = arith.constant 0 : index
    %c0_20 = arith.constant 0 : index
    %c0_21 = arith.constant 0 : index
    %50 = vector.load %arg7[%c0_18, %c0_19, %c0_20, %c0_21] : memref<1x1x2x128xf32, #tpu.memory_space<vmem>>, vector<1x1x2x128xf32>
    %51 = arith.subf %13, %38 : vector<1x1x2x128xf32>
    %cst_22 = arith.constant 0.000000e+00 : f32
    %52 = vector.broadcast %cst_22 : f32 to vector<1x1x2x128xf32>
    %53 = arith.select %49, %51, %52 : vector<1x1x2x128xi1>, vector<1x1x2x128xf32>
    %54 = arith.addf %50, %53 : vector<1x1x2x128xf32>
    %c0_23 = arith.constant 0 : index
    %c0_24 = arith.constant 0 : index
    %c0_25 = arith.constant 0 : index
    %c0_26 = arith.constant 0 : index
    %55 = vector.load %arg7[%c0_23, %c0_24, %c0_25, %c0_26] : memref<1x1x2x128xf32, #tpu.memory_space<vmem>>, vector<1x1x2x128xf32>
    tpu.vector_store %arg7[%c0_23, %c0_24, %c0_25, %c0_26], %54 {strides = array<i32>} : memref<1x1x2x128xf32, #tpu.memory_space<vmem>>, vector<1x1x2x128xf32>,
    %c0_27 = arith.constant 0 : index
    %c0_28 = arith.constant 0 : index
    %c0_29 = arith.constant 0 : index
    %c0_30 = arith.constant 0 : index
    %56 = vector.load %arg8[%c0_27, %c0_28, %c0_29, %c0_30] : memref<1x1x2x128xi32, #tpu.memory_space<vmem>>, vector<1x1x2x128xi32>
    %57 = arith.extui %49 : vector<1x1x2x128xi1> to vector<1x1x2x128xi32>
    %58 = arith.addi %56, %57 : vector<1x1x2x128xi32>
    %c0_31 = arith.constant 0 : index
    %c0_32 = arith.constant 0 : index
    %c0_33 = arith.constant 0 : index
    %c0_34 = arith.constant 0 : index
    %59 = vector.load %arg8[%c0_31, %c0_32, %c0_33, %c0_34] : memref<1x1x2x128xi32, #tpu.memory_space<vmem>>, vector<1x1x2x128xi32>
    tpu.vector_store %arg8[%c0_31, %c0_32, %c0_33, %c0_34], %58 {strides = array<i32>} : memref<1x1x2x128xi32, #tpu.memory_space<vmem>>, vector<1x1x2x128xi32>,
    %c0_i32_35 = arith.constant 0 : i32
    %60 = arith.cmpi eq, %arg2, %c0_i32_35 : i32
    %61 = arith.extui %60 : i1 to i32
    %c0_i32_36 = arith.constant 0 : i32
    %62 = arith.cmpi ne, %61, %c0_i32_36 : i32
    scf.if %62 {
      %c0_37 = arith.constant 0 : index
      %c0_38 = arith.constant 0 : index
      %c0_39 = arith.constant 0 : index
      %c0_40 = arith.constant 0 : index
      %63 = vector.load %arg7[%c0_37, %c0_38, %c0_39, %c0_40] : memref<1x1x2x128xf32, #tpu.memory_space<vmem>>, vector<1x1x2x128xf32>
      %cst_41 = arith.constant dense<0.000000e+00> : vector<1x1x128xf32>
      %64 = vector.multi_reduction <add>, %63, %cst_41 [2] : vector<1x1x2x128xf32> to vector<1x1x128xf32>
      %65 = vector.shape_cast %64 : vector<1x1x128xf32> to vector<1x1x1x128xf32>
      %c0_42 = arith.constant 0 : index
      %c0_43 = arith.constant 0 : index
      %c0_44 = arith.constant 0 : index
      %c0_45 = arith.constant 0 : index
      %66 = vector.load %arg5[%c0_42, %c0_43, %c0_44, %c0_45] : memref<1x1x1x128xf32, #tpu.memory_space<vmem>>, vector<1x1x1x128xf32>
      tpu.vector_store %arg5[%c0_42, %c0_43, %c0_44, %c0_45], %65 {strides = array<i32>} : memref<1x1x1x128xf32, #tpu.memory_space<vmem>>, vector<1x1x1x128xf32>,
      %c0_46 = arith.constant 0 : index
      %c0_47 = arith.constant 0 : index
      %c0_48 = arith.constant 0 : index
      %c0_49 = arith.constant 0 : index
      %67 = vector.load %arg8[%c0_46, %c0_47, %c0_48, %c0_49] : memref<1x1x2x128xi32, #tpu.memory_space<vmem>>, vector<1x1x2x128xi32>
      %cst_50 = arith.constant dense<0> : vector<1x1x128xi32>
      %68 = vector.multi_reduction <add>, %67, %cst_50 [2] : vector<1x1x2x128xi32> to vector<1x1x128xi32>
      %69 = vector.shape_cast %68 : vector<1x1x128xi32> to vector<1x1x1x128xi32>
      %c0_51 = arith.constant 0 : index
      %c0_52 = arith.constant 0 : index
      %c0_53 = arith.constant 0 : index
      %c0_54 = arith.constant 0 : index
      %70 = vector.load %arg6[%c0_51, %c0_52, %c0_53, %c0_54] : memref<1x1x1x128xi32, #tpu.memory_space<vmem>>, vector<1x1x1x128xi32>
      tpu.vector_store %arg6[%c0_51, %c0_52, %c0_53, %c0_54], %69 {strides = array<i32>} : memref<1x1x1x128xi32, #tpu.memory_space<vmem>>, vector<1x1x1x128xi32>,
    } else {
    }
    return
  }
  func.func @transform_0(%arg0: i32, %arg1: i32, %arg2: i32) -> (i32, i32, i32, i32) {
    %c1_i32 = arith.constant 1 : i32
    %0 = arith.muli %arg1, %c1_i32 : i32
    %1 = arith.addi %0, %arg2 : i32
    %c0_i32 = arith.constant 0 : i32
    %c0_i32_0 = arith.constant 0 : i32
    %c0_i32_1 = arith.constant 0 : i32
    return %arg0, %c0_i32, %1, %c0_i32_0 : i32, i32, i32, i32
  }
  func.func @transform_1(%arg0: i32, %arg1: i32, %arg2: i32) -> (i32, i32, i32, i32) {
    %c1_i32 = arith.constant 1 : i32
    %0 = arith.muli %arg1, %c1_i32 : i32
    %1 = arith.addi %0, %arg2 : i32
    %c0_i32 = arith.constant 0 : i32
    %c0_i32_0 = arith.constant 0 : i32
    %c0_i32_1 = arith.constant 0 : i32
    return %arg0, %c0_i32, %1, %c0_i32_0 : i32, i32, i32, i32
  }
  func.func @transform_2(%arg0: i32, %arg1: i32, %arg2: i32) -> (i32, i32, i32, i32) {
    %c0_i32 = arith.constant 0 : i32
    %c0_i32_0 = arith.constant 0 : i32
    %c0_i32_1 = arith.constant 0 : i32
    return %arg0, %arg1, %c0_i32, %c0_i32_0 : i32, i32, i32, i32
  }
  func.func @transform_3(%arg0: i32, %arg1: i32, %arg2: i32) -> (i32, i32, i32, i32) {
    %c0_i32 = arith.constant 0 : i32
    %c0_i32_0 = arith.constant 0 : i32
    %c0_i32_1 = arith.constant 0 : i32
    return %arg0, %arg1, %c0_i32, %c0_i32_0 : i32, i32, i32, i32
  }
}

</mosaic_0001>

<bundles_post_ra>
// kernel: tpu_custom_call.1
= control target key start
LH: loop header
LB: loop body
LE: loop exit
PB: predicated region body
PF: predicated region fallthrough
CT: control target
= control target key end

     0   :  { %s1082_s0 = inlined_call_operand.hbm [shape: f32[2,4,2,128], index: 0, kind: input, shape index: {}]   ;;  %s1083_s1 = inlined_call_operand.hbm [shape: s32[2,1,2,128], index: 1, kind: input, shape index: {}]   ;;  %s1084_s2 = inlined_call_operand.hbm [shape: f32[2,1,1,128], index: 2, kind: output, shape index: {0}]   ;;  %s1085_s3 = inlined_call_operand.hbm [shape: s32[2,1,1,128], index: 3, kind: output, shape index: {1}]  }
   0x1   :  { %1086 = sst [smem:[#allocation16_spill]] %s1082_s0 }
   0x2   :  { %9 = vsyncpa [#allocation5], 0 }
   0x3   :  { %11 = vsyncpa [#allocation5 + $0x1], 0 }
   0x4   :  { %12 = vsyncpa [#allocation8], 0 }
   0x5   :  { %14 = vsyncpa [#allocation8 + $0x1], 0 }
   0x6   :  { %15 = vsyncpa [#allocation6], 0 }
   0x7   :  { %17 = vsyncpa [#allocation6 + $0x1], 0 }
   0x8   :  { %18 = vsyncpa [#allocation11], 0 }
   0x9   :  { %20 = vsyncpa [#allocation11 + $0x1], 0  ;;  %s834_s12 = smov 0   ;;  %s836_s13 = smov 0  }
   0xa   :  { %s838_s14 = smov 0   ;;  %s840_s15 = smov 0  }
   0xb   :  { %s842_s16 = smov 0   ;;  %s844_s17 = smov 0  }
   0xc LB: > { %s531_s18 = sadd.s32 4294967295, %s804_s17   ;;  %s532_s19 = sadd.s32 4294967294, %s804_s17   ;;  %s804_s17 = sphi %s844_s17, %s26_s17   ;;  %s800_s16 = sphi %s842_s16, %s1101_s16   ;;  %s796_s15 = sphi %s840_s15, %s1100_s15   ;;  %s792_s14 = sphi %s838_s14, %s1099_s14   ;;  %s788_s13 = sphi %s836_s13, %s1098_s13   ;;  %s784_s12 = sphi %s834_s12, %s1097_s12  }
   0xd   : > { %s45_s20 = sadd.s32 1, %s800_s16  ;;  %s56_s21 = sadd.s32 1, %s792_s14 }
   0xe   : > { %p47_p0 = scmp.ge.s32.totalorder %s45_s20, 2  ;;  %p63_p1 = scmp.ne.s32.totalorder %s792_s14, %s788_s13 }
   0xf   : > { %p64_p2 = scmp.eq.s32.totalorder %s804_s17, 0  ;;  %p69_p3 = scmp.ne.s32.totalorder %s788_s13, %s784_s12 }
  0x10   : > { %s1103_s20 = smov (%p47_p0, %s45_s20), 0  ;;  %p70_p5 = scmp.eq.s32.totalorder %s531_s18, 0 }
  0x11   : > { %p875_p4 = por %p64_p2, %p63_p1  ;;  %s51_s23 = ssub.s32 %s800_s16, %s1103_s20 }
  0x12   : > { %p125_p6 = scmp.eq.s32.totalorder %s531_s18, 1  ;;  %p54_p7 = scmp.eq.s32.totalorder %s51_s23, 0 }
  0x13   : > { %p881_p8 = por %p70_p5, %p69_p3  ;;  %p131_p10 = scmp.eq.s32.totalorder %s532_s19, 1 }
  0x14   : > { %p885_p9 = por %p125_p6, %p63_p1  ;;  %p570_p13 = scmp.lt.s32.totalorder %s804_s17, 2 }
  0x15   : > { %s890_s26 = scalar_select %p54_p7, %s792_s14, %s56_s21  }
  0x16   : > { %p892_p11 = por %p131_p10, %p69_p3  ;;  %s899_s28 = sand.u32 1, %s792_s14  }
  0x17   : > { %s535_s29 = sshll.u32 %s899_s28, 3  ;;  %s547_s30 = sshll.u32 %s800_s16, 7 }
  0x18   : > { %s1091_s0 = sld [smem:[#allocation16_spill]]  ;;  %s183_s7 = scalar_lea.vmem [#allocation4], %s535_s29 }
  0x19   : > { %s192_s8 = sshll.u32 %s183_s7, 4  ;;  %p908_p0 = pnand %p570_p13, %p875_p4  ;;  %s193_s8 = int_to_ptr.vmem [resolvable:$true] %s192_s8 }
  0x1a   : > { %p540_p1 = scmp.ge.s32.totalorder %s804_s17, 1  ;;  %s180_s10 = scalar_lea.sflag [#allocation5], %s899_s28 }
  0x1b   : > { %p636_p2 = pneg %p908_p0  ;;  %s647_s11 = scalar_lea.vmem %s193_s8, 128 }
  0x1c   : > { %p648_p3 = scmp.ne.s32.totalorder %s193_s8, %s647_s11  ;;  %s806_s18 = smov [#allocation4]  }
  0x1d   : > { %s652_s19 = sshll.u32 %s806_s18, 4  ;;  %s653_s19 = int_to_ptr.vmem [resolvable:$false] %s652_s19 }
  0x1e   : > { %s191_s6 = scalar_lea.hbm %s1091_s0, %s547_s30  ;;  %p650_p5 = pnand %p648_p3, %p636_p2 }
  0x1f   : > { %s654_s21 = scalar_lea.vmem %s653_s19, 256  ;;  %p655_p4 = scmp.lt.s32.totalorder %s193_s8, %s653_s19 }
  0x20   : > { %p651_p6 = pneg %p650_p5  ;;  %p656_p7 = scmp.lt.s32.totalorder %s654_s21, %s647_s11 }
  0x22   : > { %p657_p10 = por %p656_p7, %p655_p4 }
  0x24   : > { %p658_p13 = pnand %p657_p10, %p651_p6 }
  0x26   : > { %661 = shalt.err (!%p658_p13)
}
  0x27   : > { %s807_s22 = smov 32   ;;  %s808_s23 = smov 2  }
  0x28   : > { %559 = dma.hbm_to_vmem [thread:$0]  (!%p908_p0), %s191_s6, 128, %s193_s8, %s180_s10, %s807_s22, %s807_s22, %s808_s23  }
  0x29   : > { %p220_p3 = scmp.lt.s32.totalorder %s804_s17, 3  ;;  %s538_s29 = sshll.u32 %s899_s28, 1 }
  0x2a   : > { %s539_s30 = sshll.u32 %s800_s16, 5  ;;  %s206_s18 = scalar_lea.vmem [#allocation7], %s538_s29 }
  0x2b   : > { %p926_p5 = pnand %p540_p1, %p220_p3  ;;  %s213_s11 = scalar_lea.hbm %s1083_s1, %s539_s30 }
  0x2c   : > { %s215_s19 = sshll.u32 %s206_s18, 4  ;;  %s203_s21 = scalar_lea.sflag [#allocation8], %s899_s28  ;;  %s216_s19 = int_to_ptr.vmem [resolvable:$true] %s215_s19 }
  0x2d   : > { %s675_s0 = scalar_lea.vmem %s216_s19, 32  ;;  %s809_s6 = smov [#allocation7]  }
  0x2e   : > { %p676_p6 = scmp.ne.s32.totalorder %s216_s19, %s675_s0  ;;  %s680_s8 = sshll.u32 %s809_s6, 4  ;;  %s681_s8 = int_to_ptr.vmem [resolvable:$false] %s680_s8 }
  0x2f   : > { %s682_s10 = scalar_lea.vmem %s681_s8, 64  ;;  %p683_p1 = scmp.lt.s32.totalorder %s216_s19, %s681_s8 }
  0x30   : > { %p678_p4 = pnand %p676_p6, %p636_p2  ;;  %p684_p10 = scmp.lt.s32.totalorder %s682_s10, %s675_s0 }
  0x32   : > { %p679_p7 = pneg %p678_p4  ;;  %p685_p13 = por %p684_p10, %p683_p1 }
  0x34   : > { %p686_p3 = pnand %p685_p13, %p679_p7 }
  0x36   : > { %689 = shalt.err (!%p686_p3)
}
  0x37   : > { %562 = dma.hbm_to_vmem [thread:$0]  (!%p908_p0), %s213_s11, 32, %s216_s19, %s203_s21  }
  0x38   : > { %224 = sbr.rel (%p926_p5) target bundleno = 166 (0xa6), region = 28  ;;  %s942_s28 = sand.u32 (!%p926_p5), 1, %s788_s13  }
  0x39   : > { %s541_s22 = sshll.u32 (!%p926_p5), %s942_s28, 3  ;;  %s227_s23 = scalar_lea.sflag (!%p926_p5), [#allocation5], %s942_s28 }
  0x3a   : > { %s230_s29 = scalar_lea.vmem (!%p926_p5), [#allocation4], %s541_s22 }
  0x3d   : > { %767 = dma.done.wait (%p881_p8), %s227_s23, 128  }
  0x3e   : > { %769 = vsyncadd (%p881_p8), %s227_s23, 4294967168  ;;  %s542_s0 = sshll.u32 %s942_s28, 1  ;;  %s236_s9 = scalar_lea.sflag [#allocation8], %s942_s28 }
  0x3f   : > { %s239_s30 = scalar_lea.vmem [#allocation7], %s542_s0 }
  0x40   : > { %771 = dma.done.wait (%p881_p8), %s236_s9, 32  }
  0x41   : > { %773 = vsyncadd (%p881_p8), %s236_s9, 4294967264  ;;  %v810_v0 = vmov 0   ;;  %v327_v1 = vlaneseq  ;;  %v811_v2 = vmov 0.0   ;;  %vm283_vm0 = vcmask 1041408   ;;  %v956_v4 = vld [vmem:[%s230_s29] sm:$0x3] }
  0x42   : > { %277 = vst [vmem:[#allocation3] sm:$0x3] %v810_v0  ;;  %276 = vst [vmem:[#allocation2] sm:$0x3] %v811_v2  ;;  %v958_v5 = vld [vmem:[%s230_s29 + $0x2] sm:$0x3] }
  0x43   : > { %v328_v3 = vshrl.u32 %v327_v1, 7  ;;  %v960_v6 = vld [vmem:[%s230_s29 + $0x4] sm:$0x3]  ;;  %v962_v7 = vld [vmem:[%s230_s29 + $0x6] sm:$0x3]  ;;  %v284_v8 = vsel %vm283_vm0, %v956_v4, -inf }
  0x44   : > { %v285_v9 = vsel %vm283_vm0, %v958_v5, -inf  ;;  %v286_v10 = vsel %vm283_vm0, %v960_v6, -inf  ;;  %v287_v11 = vsel %vm283_vm0, %v962_v7, -inf  ;;  %v972_v13 = vld [vmem:[%s239_s30] sm:$0x3]  ;;  %s269_s24 = scalar_lea.vmem [#allocation10], %s942_s28 }
  0x45   : > { %v288_v12 = vmax.f32 %v284_v8, %v285_v9  ;;  %vm332_vm1 = vcmp.lt.s32.totalorder %v328_v3, 2  ;;  %v289_v14 = vmax.f32 %v286_v10, %v287_v11  ;;  %vm331_vm2 = vcmp.ne.s32.totalorder %v972_v13, 4294967295  ;;  %s396_s4 = sshll.u32 %s269_s24, 4  ;;  %s543_s5 = sshll.u32 %s796_s15, 4  ;;  %s998_s4 = int_to_ptr.vmem [resolvable:$true] %s396_s4 }
  0x46   : > { %vm977_vm3 = vmand %vm331_vm2, %vm332_vm1  ;;  %s394_s18 = scalar_lea.hbm %s1085_s3, %s543_s5  ;;  %s369_s19 = scalar_lea.sflag [#allocation11], %s942_s28 }
  0x47   : > { %v975_v15 = vmax.f32 %v288_v12, %v289_v14  ;;  %v340_v18 = vsel %vm977_vm3, 1, %v810_v0  ;;  %s690_s21 = scalar_lea.vmem %s998_s4, 16  ;;  %s812_s6 = smov [#allocation10]  }
  0x48   : > { %p691_p8 = scmp.ne.s32.totalorder %s998_s4, %s690_s21  ;;  %s694_s8 = sshll.u32 %s812_s6, 4  ;;  %s695_s8 = int_to_ptr.vmem [resolvable:$false] %s694_s8 }
  0x49   : > { %v339_v17 = vld [vmem:[#allocation3] sm:$0x3]  ;;  %v291_v19 = vsub.f32 %v956_v4, %v975_v15  ;;  %v292_v20 = vsub.f32 %v958_v5, %v975_v15  ;;  %v293_v21 = vsub.f32 %v960_v6, %v975_v15  ;;  %v294_v22 = vsub.f32 %v962_v7, %v975_v15  ;;  %s696_s10 = scalar_lea.vmem %s695_s8, 32  ;;  %p697_p5 = scmp.lt.s32.totalorder %s998_s4, %s695_s8 }
  0x4a   : > { %v341_v23 = vadd.s32 %v340_v18, %v339_v17  ;;  %p692_p0 = pnand %p691_p8, %p885_p9  ;;  %p698_p6 = scmp.lt.s32.totalorder %s696_s10, %s690_s21 }
  0x4b   : > { %v295_v24 = vmul.f32 1.442695, %v291_v19  ;;  %v297_v25 = vmul.f32 1.442695, %v292_v20  ;;  %v299_v26 = vmul.f32 1.442695, %v293_v21 }
  0x4c   : > { %v301_v27 = vmul.f32 1.442695, %v294_v22  ;;  %342 = vst [vmem:[#allocation3] sm:$0x3] %v341_v23  ;;  %p693_p2 = pneg %p692_p0  ;;  %p699_p4 = por %p698_p6, %p697_p5 }
  0x4d   : > { %624 = vpow2.f32 %v295_v24 }
  0x4e   : > { %626 = vpow2.f32 %v297_v25  ;;  %p700_p7 = pnand %p699_p4, %p693_p2 }
  0x4f   : > { %628 = vpow2.f32 %v299_v26 }
  0x50   : > { %630 = vpow2.f32 %v301_v27 }
  0x53   : > { %v355_v28 = vld [vmem:[#allocation3] sm:$0x3] }
  0x54   : > { %v356_v29 = vsel %vm283_vm0, %v355_v28, 0 }
  0x55   : > { %v357_v30 = vrot.slane %v356_v29, 4 }
  0x57   : > { %v358_v31 = vadd.s32 %v357_v30, %v356_v29 }
  0x59   : > { %v359_v32 = vrot.slane %v358_v31, 2 }
  0x5a   : > { %v625_v33 = vpop.eup %624 }
  0x5b   : > { %v627_v34 = vpop.eup %626  ;;  %v303_v35 = vsel %vm283_vm0, %v625_v33, 0.0  ;;  %v360_v36 = vadd.s32 %v359_v32, %v358_v31 }
  0x5c   : > { %v629_v37 = vpop.eup %628  ;;  %v304_v38 = vsel %vm283_vm0, %v627_v34, 0.0 }
  0x5d   : > { %v631_v39 = vpop.eup %630  ;;  %v305_v40 = vadd.f32 %v304_v38, %v303_v35  ;;  %v306_v41 = vsel %vm283_vm0, %v629_v37, 0.0  ;;  %v361_v42 = vrot.slane %v360_v36, 1 }
  0x5e   : > { %v308_v43 = vsel %vm283_vm0, %v631_v39, 0.0 }
  0x5f   : > { %v307_v44 = vadd.f32 %v306_v41, %v305_v40  ;;  %v362_v45 = vadd.s32 %v361_v42, %v360_v36 }
  0x61   : > { %v309_v46 = vadd.f32 %v308_v43, %v307_v44  ;;  %363 = vst [vmem:[%s269_s24] sm:$0x1] %v362_v45 }
  0x62   : > { %703 = shalt.err (!%p700_p7)
}
  0x63   : > { %s704_s22 = scalar_lea.hbm %s394_s18, 16  ;;  %s708_s0 = scalar_lea.hbm %s1085_s3, 32 }
  0x64   : > { %p705_p1 = scmp.ne.s32.totalorder %s394_s18, %s704_s22  ;;  %p709_p3 = scmp.lt.s32.totalorder %s394_s18, %s1085_s3 }
  0x65   : > { %p710_p8 = scmp.lt.s32.totalorder %s708_s0, %s704_s22 }
  0x66   : > { %p706_p10 = pnand %p705_p1, %p885_p9 }
  0x67   : > { %p711_p0 = por %p710_p8, %p709_p3 }
  0x68   : > { %p707_p13 = pneg %p706_p10 }
  0x6a   : > { %p712_p12 = pnand %p711_p0, %p707_p13 }
  0x6c   : > { %715 = shalt.err (!%p712_p12)
}
  0x6d   : > { %553 = dma.vmem_to_hbm [thread:$0]  (%p885_p9), %s998_s4, 16, %s394_s18, %s369_s19   ;;  %632 = vlog2.f32 %v309_v46  ;;  %vm313_vm4 = vcmp.eq.s32.totalorder %v972_v13, 0  ;;  %vm316_vm5 = vcmp.eq.s32.totalorder %v972_v13, 1  ;;  %vm319_vm6 = vcmp.eq.s32.totalorder %v972_v13, 2  ;;  %v334_v58 = vld [vmem:[#allocation2] sm:$0x3] }
  0x6e   : > { %v314_v47 = vsel %vm313_vm4, %v956_v4, 0.0  ;;  %v317_v48 = vsel %vm316_vm5, %v958_v5, 0.0  ;;  %v320_v50 = vsel %vm319_vm6, %v960_v6, 0.0  ;;  %vm322_vm7 = vcmp.eq.s32.totalorder %v972_v13, 3  ;;  %s263_s24 = scalar_lea.vmem [#allocation9], %s942_s28  ;;  %s380_s18 = scalar_lea.hbm %s1084_s2, %s543_s5 }
  0x6f   : > { %v318_v49 = vadd.f32 %v317_v48, %v314_v47  ;;  %v323_v52 = vsel %vm322_vm7, %v962_v7, 0.0  ;;  %s382_s4 = sshll.u32 %s263_s24, 4  ;;  %s365_s19 = scalar_lea.sflag [#allocation6], %s942_s28  ;;  %s1035_s4 = int_to_ptr.vmem [resolvable:$true] %s382_s4 }
  0x70   : > { %s716_s21 = scalar_lea.vmem %s1035_s4, 16  ;;  %s813_s6 = smov [#allocation9]  }
  0x71   : > { %v321_v51 = vadd.f32 %v320_v50, %v318_v49  ;;  %p717_p12 = scmp.ne.s32.totalorder %s1035_s4, %s716_s21  ;;  %s720_s8 = sshll.u32 %s813_s6, 4  ;;  %s721_s8 = int_to_ptr.vmem [resolvable:$false] %s720_s8 }
  0x72   : > { %s722_s10 = scalar_lea.vmem %s721_s8, 32  ;;  %p723_p6 = scmp.lt.s32.totalorder %s1035_s4, %s721_s8 }
  0x73   : > { %v324_v55 = vadd.f32 %v323_v52, %v321_v51  ;;  %p718_p2 = pnand %p717_p12, %p885_p9  ;;  %p724_p4 = scmp.lt.s32.totalorder %s722_s10, %s716_s21 }
  0x75   : > { %p719_p5 = pneg %p718_p2  ;;  %p725_p7 = por %p724_p4, %p723_p6 }
  0x77   : > { %p726_p1 = pnand %p725_p7, %p719_p5 }
  0x7a   : > { %v633_v53 = vpop.eup %632 }
  0x7b   : > { %v311_v54 = vmul.f32 0.6931472, %v633_v53 }
  0x7d   : > { %v312_v56 = vadd.f32 %v311_v54, %v975_v15 }
  0x7f   : > { %v335_v57 = vsub.f32 %v312_v56, %v324_v55 }
  0x81   : > { %v336_v59 = vsel %vm977_vm3, %v335_v57, 0.0 }
  0x82   : > { %v337_v60 = vadd.f32 %v336_v59, %v334_v58 }
  0x84   : > { %338 = vst [vmem:[#allocation2] sm:$0x3] %v337_v60 }
  0x8b   : > { %v346_v61 = vld [vmem:[#allocation2] sm:$0x3] }
  0x8c   : > { %v347_v62 = vsel %vm283_vm0, %v346_v61, 0.0 }
  0x8d   : > { %v348_v63 = vrot.slane %v347_v62, 4 }
  0x8f   : > { %v349_v0 = vadd.f32 %v348_v63, %v347_v62 }
  0x91   : > { %v350_v1 = vrot.slane %v349_v0, 2 }
  0x93   : > { %v351_v2 = vadd.f32 %v350_v1, %v349_v0 }
  0x95   : > { %v352_v3 = vrot.slane %v351_v2, 1 }
  0x97   : > { %v353_v4 = vadd.f32 %v352_v3, %v351_v2 }
  0x99   : > { %354 = vst [vmem:[%s263_s24] sm:$0x1] %v353_v4 }
  0x9a   : > { %729 = shalt.err (!%p726_p1)
}
  0x9b   : > { %s730_s15 = scalar_lea.hbm %s380_s18, 16  ;;  %s734_s22 = scalar_lea.hbm %s1084_s2, 32 }
  0x9c   : > { %p731_p10 = scmp.ne.s32.totalorder %s380_s18, %s730_s15  ;;  %p735_p8 = scmp.lt.s32.totalorder %s380_s18, %s1084_s2 }
  0x9d   : > { %p736_p0 = scmp.lt.s32.totalorder %s734_s22, %s730_s15 }
  0x9e   : > { %p732_p13 = pnand %p731_p10, %p885_p9 }
  0x9f   : > { %p737_p12 = por %p736_p0, %p735_p8 }
  0xa0   : > { %p733_p3 = pneg %p732_p13 }
  0xa2   : > { %p738_p2 = pnand %p737_p12, %p733_p3 }
  0xa4   : > { %741 = shalt.err (!%p738_p2)
}
  0xa5   : > { %552 = dma.vmem_to_hbm [thread:$0]  (%p885_p9), %s1035_s4, 16, %s380_s18, %s365_s19  }
  0xa6 PF: > { %s408_s0 = sand.u32 1, %s784_s12   ;;  %p1096_p5 = scmp.ge.s32.totalorder %s804_s17, 2 }
  0xa7   : > { %s409_s9 = scalar_lea.sflag [#allocation6], %s408_s0 }
  0xa8   : > { %p564_p6 = pnand %p1096_p5, %p892_p11 }
  0xaa   : > { %p565_p4 = pneg %p564_p6 }
  0xac   : > { %775 = dma.done.wait (%p565_p4), %s409_s9, 16  }
  0xad   : > { %777 = vsyncadd (%p565_p4), %s409_s9, 4294967280  ;;  %s417_s30 = scalar_lea.sflag [#allocation11], %s408_s0 }
  0xae   : > { %779 = dma.done.wait (%p565_p4), %s417_s30, 16  }
  0xaf   : > { %781 = vsyncadd (%p565_p4), %s417_s30, 4294967280  ;;  %s26_s17 = sadd.s32 1, %s804_s17   ;;  %s1097_s12 = smov %s788_s13 }
  0xb0   : > { %p23_p7 = scmp.ge.s32.totalorder %s26_s17, 4   ;;  %s1098_s13 = smov %s792_s14 }
  0xb1   : > { %s1099_s14 = smov %s890_s26  ;;  %s1100_s15 = smov %s800_s16 }
  0xb2   : > { %s1101_s16 = smov %s1103_s20  ;;  %25 = sbr.rel (!%p23_p7) target bundleno = 12 (0xc), region = 111 }
  0xb7   :  { %421 = vsyncpa [#allocation5], 1 }
  0xb8   :  { %423 = vsyncpa [#allocation5 + $0x1], 1 }
  0xb9   :  { %424 = vsyncpa [#allocation8], 1 }
  0xba   :  { %426 = vsyncpa [#allocation8 + $0x1], 1 }
  0xbb   :  { %427 = vsyncpa [#allocation6], 1 }
  0xbc   :  { %429 = vsyncpa [#allocation6 + $0x1], 1 }
  0xbd   :  { %430 = vsyncpa [#allocation11], 1 }
  0xbe   :  { %432 = vsyncpa [#allocation11 + $0x1], 1 }

</bundles_post_ra>
